<compile_context>
chip_gen: v7x
topology: tpu7x:2x2x1
jax: 0.10.0
libtpu: 0.0.40
codegen_flags: <defaults>
</compile_context>

<pallas_src>
import functools

import jax
import jax.numpy as jnp
from jax.experimental import pallas as pl
from jax.experimental.pallas import tpu as pltpu


_MXU_THRESHOLD = 64 * 64     # F*C above which dense1 goes back to the MXU
_GRID_BATCH_THRESHOLD = 1024  # below this, the grid-less single-shot path wins
_BATCH_TILE = 512             # lane tile for the gridded path (>=512 amortizes per-step overhead)


def _toy_mlp_kernel(xT_ref, p_ref, o_ref, *, proba, n_features, n_classes):
    """Body. xT (2, Bt) batch-on-lanes; p packed param slab; o (C, Bt)."""
    F, C = n_features, n_classes
    xT = xT_ref[...]                                    # (2, Bt)

    # Packed-parameter slab, single DMA (see pack_toy_module_2d_params):
    #   rows 0..F-1   : [b0[f], w0[f,0], w0[f,1], w1T[f,0], ..., w1T[f,C-1]]
    #   rows F..F+C-1 : [b1[c], 0, ...]
    p = p_ref[...]
    b0 = p[0:F, 0:1]                                    # (F, 1)
    w0c0 = p[0:F, 1:2]                                  # (F, 1)
    w0c1 = p[0:F, 2:3]                                  # (F, 1)
    w1 = p[0:F, 3:3 + C]                                # (F, C)  (== dense1.weight.T)
    b1 = p[F:F + C, 0:1]                                # (C, 1)

    # dense0: K=2 contraction as two lane-wide FMAs on the VPU (no MXU push/drain).
    hT = w0c0 * xT[0:1, :] + w0c1 * xT[1:2, :] + b0     # (F, Bt)

    # nonlin: ReLU
    hT = jnp.maximum(hT, 0.0)

    # dropout(p=0.5): identity in eval mode.
    # TODO(synk): training-mode dropout (pltpu.prng_seed + stateful_bernoulli) not emitted.

    # dense1: logitsT[c, :] = sum_f w1[f, c] * hT[f, :] + b1[c]
    if F * C <= _MXU_THRESHOLD:
        # Tiny contraction: per-class scale (VPU) + sublane reduce (XLU), MXU idle.
        rows = []
        for c in range(C):                               # static unroll, C is tiny
            rows.append(jnp.sum(w1[:, c:c + 1] * hT, axis=0, keepdims=True))
        logitsT = jnp.concatenate(rows, axis=0) + b1     # (C, Bt)
    else:
        logitsT = jnp.dot(w1.T, hT, preferred_element_type=jnp.float32) + b1

    if proba:
        if C == 2:
            # softmax over 2 classes == sigmoid(2*l_c - (l_0 + l_1)); exact identity,
            # in-lane on VPU/EUP, no cross-sublane max/exp/sum reduce.
            s = logitsT[0:1, :] + logitsT[1:2, :]
            logitsT = jax.nn.sigmoid(2.0 * logitsT - s)
        else:
            # general softmax over the class (sublane) axis
            m = jnp.max(logitsT, axis=0, keepdims=True)
            e = jnp.exp(logitsT - m)
            s = jnp.sum(e, axis=0, keepdims=True)
            logitsT = e * pl.reciprocal(s, approx=True)  # EUP vrcp: free slot

    o_ref[...] = logitsT.astype(o_ref.dtype)


def pack_toy_module_2d_params(dense0_weight, dense0_bias, dense1_weight, dense1_bias):
    """Pack both Linear layers into one f32 slab (one DMA per forward).

    Takes torch nn.Linear layouts: dense0_weight (F, 2), dense0_bias (F,),
    dense1_weight (C, F), dense1_bias (C,).  Pack once, reuse across calls.
    Slab shape: (F + C, 3 + C).
    """
    F = dense0_weight.shape[0]
    C = dense1_weight.shape[0]
    slab = jnp.zeros((F + C, 3 + C), jnp.float32)
    slab = slab.at[0:F, 0].set(dense0_bias.astype(jnp.float32))
    slab = slab.at[0:F, 1].set(dense0_weight[:, 0].astype(jnp.float32))
    slab = slab.at[0:F, 2].set(dense0_weight[:, 1].astype(jnp.float32))
    slab = slab.at[0:F, 3:3 + C].set(jnp.transpose(dense1_weight).astype(jnp.float32))
    slab = slab.at[F:F + C, 0].set(dense1_bias.astype(jnp.float32))
    return slab


def toy_module_2d_forward(x, params, *, proba=False):
    """Pallas forward of ToyModule2D.

    x      : (B, 2) float32
    params : packed slab from pack_toy_module_2d_params
    returns (B, C) float32 (logits, or probabilities if proba=True)
    """
    B = x.shape[0]
    rows, cols = params.shape
    C = cols - 3
    F = rows - C

    # Batch-on-lanes layout: xT (2, B) in, logitsT (C, B) out.
    xT = jnp.transpose(x).astype(jnp.float32)            # (2, B)

    kernel = functools.partial(_toy_mlp_kernel, proba=proba,
                               n_features=F, n_classes=C)

    if B < _GRID_BATCH_THRESHOLD:
        # Grid-less: all operands mapped whole into VMEM, body runs once.
        # No pipeline prologue/epilogue; exactly 2 input DMAs + 1 output DMA.
        vmem = pl.BlockSpec(memory_space=pltpu.MemorySpace.VMEM)
        outT = pl.pallas_call(
            kernel,
            out_shape=jax.ShapeDtypeStruct((C, B), jnp.float32),
            in_specs=[vmem, vmem],
            out_specs=vmem,
        )(xT, params)
    else:
        # Large B: 1-D grid over 512-wide lane tiles of the batch, "parallel" so
        # Mosaic can shard across v7x's two TensorCores.  Params block index is
        # constant -> fetched once.  Per-step VMEM stays far under every chip's
        # scoped default (v5e 16 MiB / v6e 32 MiB / v7x 32 of 64 MiB).
        tb = _BATCH_TILE
        Bp = ((B + tb - 1) // tb) * tb
        if Bp != B:
            xT = jnp.pad(xT, ((0, 0), (0, Bp - B)))
        outT = pl.pallas_call(
            kernel,
            out_shape=jax.ShapeDtypeStruct((C, Bp), jnp.float32),
            grid_spec=pltpu.PrefetchScalarGridSpec(
                num_scalar_prefetch=0,
                grid=(Bp // tb,),
                in_specs=[
                    pl.BlockSpec((2, tb), lambda i: (0, i)),
                    pl.BlockSpec((rows, cols), lambda i: (0, 0)),
                ],
                out_specs=pl.BlockSpec((C, tb), lambda i: (0, i)),
            ),
            compiler_params=pltpu.CompilerParams(
                dimension_semantics=("parallel",)),
        )(xT, params)
        if Bp != B:
            outT = outT[:, :B]

    return jnp.transpose(outT)                            # (B, C)


def init_toy_module_2d_params(key, n_classes=2, num_features=10):
    """torch.nn.Linear-convention params (weight (out,in), bias (out,)),
    U(-1/sqrt(fan_in), 1/sqrt(fan_in)) init."""
    k0, k1, k2, k3 = jax.random.split(key, 4)
    bound0 = 1.0 / jnp.sqrt(2.0)                          # dense0 fan_in = 2
    bound1 = 1.0 / jnp.sqrt(float(num_features))          # dense1 fan_in = F
    w0 = jax.random.uniform(k0, (num_features, 2), jnp.float32, -bound0, bound0)
    b0 = jax.random.uniform(k1, (num_features,), jnp.float32, -bound0, bound0)
    w1 = jax.random.uniform(k2, (n_classes, num_features), jnp.float32, -bound1, bound1)
    b1 = jax.random.uniform(k3, (n_classes,), jnp.float32, -bound1, bound1)
    return w0, b0, w1, b1


def _reference_forward(x, w0, b0, w1, b1, proba):
    """Plain-JAX reference (torch semantics: y = x @ W.T + b), exact-ish matmuls."""
    hi = jax.lax.Precision.HIGHEST
    h = jnp.maximum(jnp.dot(x, w0.T, precision=hi) + b0, 0.0)
    logits = jnp.dot(h, w1.T, precision=hi) + b1
    return jax.nn.softmax(logits, axis=1) if proba else logits


if __name__ == "__main__":
    key = jax.random.PRNGKey(0)
    k_x, k_p, k_xl = jax.random.split(key, 3)

    batch = 8
    n_classes = 2
    num_features = 10

    x = jax.random.normal(k_x, (batch, 2), dtype=jnp.float32)
    w0, b0, w1, b1 = init_toy_module_2d_params(
        k_p, n_classes=n_classes, num_features=num_features)
    params = pack_toy_module_2d_params(w0, b0, w1, b1)    # pack once, reuse

    # logits path (proba=False, the module default)
    logits = jax.block_until_ready(toy_module_2d_forward(x, params, proba=False))
    # probability path (proba=True), 2-class exact-sigmoid branch
    probs = jax.block_until_ready(toy_module_2d_forward(x, params, proba=True))

    assert logits.shape == (batch, n_classes)
    assert jnp.allclose(logits, _reference_forward(x, w0, b0, w1, b1, False),
                        atol=1e-5, rtol=1e-5)
    assert jnp.allclose(probs, _reference_forward(x, w0, b0, w1, b1, True),
                        atol=1e-5, rtol=1e-5)

    # general softmax branch (n_classes=3) uses approx reciprocal -> looser tolerance
    w0c, b0c, w1c, b1c = init_toy_module_2d_params(k_p, n_classes=3,
                                                   num_features=num_features)
    params3 = pack_toy_module_2d_params(w0c, b0c, w1c, b1c)
    probs3 = jax.block_until_ready(toy_module_2d_forward(x, params3, proba=True))
    assert probs3.shape == (batch, 3)
    assert jnp.allclose(probs3, _reference_forward(x, w0c, b0c, w1c, b1c, True),
                        atol=5e-3, rtol=5e-3)

    # large-batch gridded path (lane tiles, "parallel" over B)
    x_big = jax.random.normal(k_xl, (2048, 2), dtype=jnp.float32)
    logits_big = jax.block_until_ready(toy_module_2d_forward(x_big, params, proba=False))
    assert logits_big.shape == (2048, n_classes)
    assert jnp.allclose(logits_big, _reference_forward(x_big, w0, b0, w1, b1, False),
                        atol=1e-5, rtol=1e-5)

    print("KERNEL_OK")
</pallas_src>

<mosaic_0001>
module attributes {stable_mosaic.version = 11 : i64} {
  func.func @_toy_mlp_kernel(%arg0: memref<2x8xf32, #tpu.memory_space<vmem>>, %arg1: memref<12x5xf32, #tpu.memory_space<vmem>>, %arg2: memref<2x8xf32, #tpu.memory_space<vmem>>) attributes {dimension_semantics = [], scalar_prefetch = 0 : i64, scratch_operands = 0 : i64, tpu.core_type = #tpu.core_type<tc>} {
    %c0 = arith.constant 0 : index
    %c0_0 = arith.constant 0 : index
    %0 = vector.load %arg0[%c0, %c0_0] : memref<2x8xf32, #tpu.memory_space<vmem>>, vector<2x8xf32>
    %c0_1 = arith.constant 0 : index
    %c0_2 = arith.constant 0 : index
    %1 = vector.load %arg1[%c0_1, %c0_2] : memref<12x5xf32, #tpu.memory_space<vmem>>, vector<12x5xf32>
    %2 = vector.extract_strided_slice %1 {offsets = [0, 0], sizes = [10, 1], strides = [1, 1]} : vector<12x5xf32> to vector<10x1xf32>
    %3 = vector.extract_strided_slice %1 {offsets = [0, 1], sizes = [10, 1], strides = [1, 1]} : vector<12x5xf32> to vector<10x1xf32>
    %4 = vector.extract_strided_slice %1 {offsets = [0, 2], sizes = [10, 1], strides = [1, 1]} : vector<12x5xf32> to vector<10x1xf32>
    %5 = vector.extract_strided_slice %1 {offsets = [0, 3], sizes = [10, 2], strides = [1, 1]} : vector<12x5xf32> to vector<10x2xf32>
    %6 = vector.extract_strided_slice %1 {offsets = [10, 0], sizes = [2, 1], strides = [1, 1]} : vector<12x5xf32> to vector<2x1xf32>
    %7 = vector.extract_strided_slice %0 {offsets = [0, 0], sizes = [1, 8], strides = [1, 1]} : vector<2x8xf32> to vector<1x8xf32>
    %8 = vector.broadcast %3 : vector<10x1xf32> to vector<10x8xf32>
    %9 = vector.broadcast %7 : vector<1x8xf32> to vector<10x8xf32>
    %10 = arith.mulf %8, %9 : vector<10x8xf32>
    %11 = vector.extract_strided_slice %0 {offsets = [1, 0], sizes = [1, 8], strides = [1, 1]} : vector<2x8xf32> to vector<1x8xf32>
    %12 = vector.broadcast %4 : vector<10x1xf32> to vector<10x8xf32>
    %13 = vector.broadcast %11 : vector<1x8xf32> to vector<10x8xf32>
    %14 = arith.mulf %12, %13 : vector<10x8xf32>
    %15 = arith.addf %10, %14 : vector<10x8xf32>
    %16 = vector.broadcast %2 : vector<10x1xf32> to vector<10x8xf32>
    %17 = arith.addf %15, %16 : vector<10x8xf32>
    %cst = arith.constant 0.000000e+00 : f32
    %18 = vector.broadcast %cst : f32 to vector<10x8xf32>
    %19 = arith.maximumf %17, %18 : vector<10x8xf32>
    %20 = vector.extract_strided_slice %5 {offsets = [0, 0], sizes = [10, 1], strides = [1, 1]} : vector<10x2xf32> to vector<10x1xf32>
    %21 = vector.broadcast %20 : vector<10x1xf32> to vector<10x8xf32>
    %22 = arith.mulf %21, %19 : vector<10x8xf32>
    %cst_3 = arith.constant dense<0.000000e+00> : vector<8xf32>
    %23 = vector.multi_reduction <add>, %22, %cst_3 [0] : vector<10x8xf32> to vector<8xf32>
    %24 = vector.shape_cast %23 : vector<8xf32> to vector<1x8xf32>
    %25 = vector.extract_strided_slice %5 {offsets = [0, 1], sizes = [10, 1], strides = [1, 1]} : vector<10x2xf32> to vector<10x1xf32>
    %26 = vector.broadcast %25 : vector<10x1xf32> to vector<10x8xf32>
    %27 = arith.mulf %26, %19 : vector<10x8xf32>
    %cst_4 = arith.constant dense<0.000000e+00> : vector<8xf32>
    %28 = vector.multi_reduction <add>, %27, %cst_4 [0] : vector<10x8xf32> to vector<8xf32>
    %29 = vector.shape_cast %28 : vector<8xf32> to vector<1x8xf32>
    %30 = tpu.concatenate %24, %29 in 0 : vector<1x8xf32>, vector<1x8xf32> -> vector<2x8xf32>
    %31 = vector.broadcast %6 : vector<2x1xf32> to vector<2x8xf32>
    %32 = arith.addf %30, %31 : vector<2x8xf32>
    %c0_5 = arith.constant 0 : index
    %c0_6 = arith.constant 0 : index
    %33 = vector.load %arg2[%c0_5, %c0_6] : memref<2x8xf32, #tpu.memory_space<vmem>>, vector<2x8xf32>
    tpu.vector_store %arg2[%c0_5, %c0_6], %32 {strides = array<i32>} : memref<2x8xf32, #tpu.memory_space<vmem>>, vector<2x8xf32>,
    return
  }
}

</mosaic_0001>

<bundles_post_ra>
// kernel: tpu_custom_call.1
= control target key start
LH: loop header
LB: loop body
LE: loop exit
PB: predicated region body
PF: predicated region fallthrough
CT: control target
= control target key end

     0   :  { %v157_v1 = vmov 2   ;;  %v158_v2 = vmov 1   ;;  %s202_s0 = inlined_call_operand.vmem [shape: f32[2,8], index: 0, kind: input, shape index: {}]   ;;  %s203_s1 = inlined_call_operand.vmem [shape: f32[12,5], index: 1, kind: input, shape index: {}]   ;;  %s204_s2 = inlined_call_operand.hbm [shape: f32[2,8], index: 2, kind: output, shape index: {}]  }
   0x1   :  { %v13_v0 = vld [vmem:[%s203_s1] sm:$0xff]  ;;  %126 = vset.pattern.permute.xlu1 %v157_v1  ;;  %125 = vset.pattern.permute.xlu0 %v158_v2 }
   0x2   :  { %7 = vsyncpa [#allocation3], 0  ;;  %32 = vperm.xlu1 %126, %v13_v0   ;;  %17 = vperm.xlu0 %125, %v13_v0   ;;  %v14_v3 = vld [vmem:[%s203_s1 + $0x8] sm:$0xf]  ;;  %v159_v4 = vmov 0   ;;  %v160_v5 = vmov 3   ;;  %v25_v7 = vlaneseq }
   0x3   :  { %v161_v6 = vmov 4   ;;  %v12_v11 = vld [vmem:[%s202_s0] sm:$0x3]  ;;  %vm69_vm0 = vcmask 64512   ;;  %vm71_vm1 = vcmask 58368   ;;  %vm99_vm2 = vcmask 1040384  }
   0x4   :  { %v26_v8 = vshrl.u32 %v25_v7, 7  ;;  %s162_s0 = smov [#allocation2]  }
   0x5   :  { %s111_s14 = sshll.u32 %s162_s0, 4  ;;  %s112_s14 = int_to_ptr.vmem [resolvable:$true] %s111_s14 }
   0x6   :  { %36 = vperm.xlu1 %126, %v14_v3   ;;  %22 = vperm.xlu0 %125, %v14_v3   ;;  %v41_v9 = vsub.s32 1, %v26_v8  ;;  %v27_v10 = vsub.s32 0, %v26_v8  ;;  %s133_s15 = scalar_lea.vmem %s112_s14, 32  ;;  %p138_p1 = scmp.lt.s32.totalorder %s112_s14, %s112_s14 }
   0x7   :  { %p134_p0 = scmp.ne.s32.totalorder %s112_s14, %s133_s15  ;;  %p139_p2 = scmp.lt.s32.totalorder %s133_s15, %s133_s15 }
   0x8   :  { %v42_v13 = vrot.slane %v12_v11, %v41_v9  ;;  %v28_v15 = vrot.slane %v12_v11, %v27_v10 }
   0x9   :  { %p140_p3 = por %p139_p2, %p138_p1 }
   0xa   :  { %128 = vset.pattern.permute.xlu1 %v159_v4  ;;  %127 = vset.pattern.permute.xlu0 %v159_v4 }
   0xb   :  { %52 = vperm.xlu1 %128, %v14_v3   ;;  %48 = vperm.xlu0 %127, %v13_v0   ;;  %p141_p4 = pnand %p140_p3, %p134_p0 }
   0xf   :  { %129 = vset.pattern.permute.xlu1 %v160_v5  ;;  %130 = vset.pattern.permute.xlu0 %v160_v5 }
  0x10   :  { %60 = vperm.xlu1 %129, %v13_v0   ;;  %64 = vperm.xlu0 %130, %v14_v3  }
  0x14   :  { %131 = vset.pattern.permute.xlu1 %v161_v6  ;;  %132 = vset.pattern.permute.xlu0 %v161_v6 }
  0x15   :  { %81 = vperm.xlu1 %131, %v13_v0  }
  0x19   :  { %85 = vperm.xlu1 %131, %v14_v3  }
  0x81   :  { %v33_v12 = vpop.permute.xlu1 %32  ;;  %v18_v14 = vpop.permute.xlu0 %17 }
  0x82   :  { %v43_v16 = vmul.f32 %v42_v13, %v33_v12  ;;  %v29_v17 = vmul.f32 %v28_v15, %v18_v14 }
  0x84   :  { %v45_v23 = vadd.f32 %v43_v16, %v29_v17 }
  0x85   :  { %v37_v18 = vpop.permute.xlu1 %36  ;;  %v23_v19 = vpop.permute.xlu0 %22 }
  0x86   :  { %v44_v20 = vmul.f32 %v42_v13, %v37_v18  ;;  %v30_v21 = vmul.f32 %v28_v15, %v23_v19 }
  0x88   :  { %v46_v22 = vadd.f32 %v44_v20, %v30_v21 }
  0x8a   :  { %v53_v24 = vpop.permute.xlu1 %52  ;;  %v49_v25 = vpop.permute.xlu0 %48 }
  0x8b   :  { %v56_v26 = vadd.f32 %v53_v24, %v46_v22  ;;  %v55_v27 = vadd.f32 %v49_v25, %v45_v23  ;;  %v101_v56 = vrot.slane %v53_v24, 2 }
  0x8d   :  { %v58_v28 = vmax.f32 %v56_v26, 0.0  ;;  %v57_v29 = vmax.f32 %v55_v27, 0.0 }
  0x8f   :  { %v61_v30 = vpop.permute.xlu1 %60  ;;  %v65_v31 = vpop.permute.xlu0 %64 }
  0x90   :  { %v67_v32 = vmul.f32 %v61_v30, %v57_v29  ;;  %v68_v33 = vmul.f32 %v65_v31, %v58_v28 }
  0x92   :  { %v70_v34 = vsel %vm69_vm0, %v67_v32, 0.0  ;;  %v72_v35 = vsel %vm71_vm1, %v68_v33, 0.0 }
  0x93   :  { %v73_v36 = vadd.f32 %v72_v35, %v70_v34 }
  0x94   :  { %v82_v37 = vpop.permute.xlu1 %81 }
  0x95   :  { %v74_v38 = vrot.slane %v73_v36, 4  ;;  %v88_v39 = vmul.f32 %v82_v37, %v57_v29 }
  0x97   :  { %v75_v40 = vadd.f32 %v74_v38, %v73_v36  ;;  %v90_v43 = vsel %vm69_vm0, %v88_v39, 0.0 }
  0x98   :  { %v86_v41 = vpop.permute.xlu1 %85 }
  0x99   :  { %v89_v42 = vmul.f32 %v86_v41, %v58_v28  ;;  %v76_v45 = vrot.slane %v75_v40, 2 }
  0x9b   :  { %v91_v44 = vsel %vm71_vm1, %v89_v42, 0.0  ;;  %v77_v48 = vadd.f32 %v76_v45, %v75_v40 }
  0x9c   :  { %v92_v46 = vadd.f32 %v91_v44, %v90_v43 }
  0x9d   :  { %v78_v51 = vrot.slane %v77_v48, 1 }
  0x9e   :  { %v93_v47 = vrot.slane %v92_v46, 4 }
  0x9f   :  { %v79_v54 = vadd.f32 %v78_v51, %v77_v48 }
  0xa0   :  { %v94_v49 = vadd.f32 %v93_v47, %v92_v46 }
  0xa2   :  { %v95_v50 = vrot.slane %v94_v49, 2 }
  0xa4   :  { %v96_v52 = vadd.f32 %v95_v50, %v94_v49 }
  0xa6   :  { %v97_v53 = vrot.slane %v96_v52, 1 }
  0xa8   :  { %v98_v55 = vadd.f32 %v97_v53, %v96_v52 }
  0xaa   :  { %v100_v57 = vsel %vm99_vm2, %v79_v54, %v98_v55 }
  0xab   :  { %v103_v58 = vadd.f32 %v101_v56, %v100_v57 }
  0xad   :  { %104 = vst.msk [vmem:[#allocation2] sm:$0x3] %vm71_vm1, %v103_v58 }
  0xae   :  { %144 = shalt.err (!%p141_p4)
}
  0xaf   :  { %s145_s18 = scalar_lea.hbm %s204_s2, 32 }
  0xb0   :  { %p146_p5 = scmp.ne.s32.totalorder %s204_s2, %s145_s18  ;;  %p149_p6 = scmp.lt.u32.totalorder %s145_s18, %s204_s2 }
  0xb2   :  { %p151_p7 = pnand %p149_p6, %p146_p5 }
  0xb4   :  { %154 = shalt.err (!%p151_p7)
}
  0xb5   :  { %114 = dma.vmem_to_hbm [thread:$0]  %s112_s14, 32, %s204_s2, [#allocation3]  }
  0xb6   :  { %155 = dma.done.wait [#allocation3], 32  }
  0xb7   :  { %156 = vsyncadd [#allocation3], 4294967264 }
  0xb8   :  { %118 = vsyncpa [#allocation3], 1 }

</bundles_post_ra>
